<compile_context>
chip_gen: v7x
topology: tpu7x:2x2x1
jax: 0.10.0
libtpu: 0.0.40
codegen_flags: <defaults>
</compile_context>

<pallas_src>
import jax
import jax.numpy as jnp
from jax.experimental import pallas as pl
from jax.experimental.pallas import tpu as pltpu


def _generator_kernel(x_ref, w1_ref, b1_ref, w2_ref, b2_ref, w3_ref, b3_ref, o_ref):
    # fc1 + relu (MXU matmul in operand dtype, f32 accumulation)
    h1 = jnp.dot(x_ref[...], w1_ref[...], preferred_element_type=jnp.float32)
    h1 = jnp.maximum(h1 + b1_ref[...], 0.0)
    # fc2 + relu
    h2 = jnp.dot(h1.astype(w2_ref.dtype), w2_ref[...],
                 preferred_element_type=jnp.float32)
    h2 = jnp.maximum(h2 + b2_ref[...], 0.0)
    # fc3 + tanh (tanh goes to the EUP; keep it in f32)
    z = jnp.dot(h2.astype(w3_ref.dtype), w3_ref[...],
                preferred_element_type=jnp.float32) + b3_ref[...]
    o_ref[...] = jnp.tanh(z).astype(o_ref.dtype)


def generator_forward(x, params, *, tm=128, use_bf16=True):
    """Fused 3-layer MLP (Linear->ReLU->Linear->ReLU->Linear->Tanh)."""
    w1, b1, w2, b2, w3, b3 = params
    B, D = x.shape
    H1 = w1.shape[1]   # 128
    H2 = w2.shape[1]   # 256
    O = w3.shape[1]    # 500

    # Batch tiling: big tiles for MXU row utilization; small batches run as a
    # single tile (grid=(1,)); larger batches are padded up to a tile multiple.
    if B <= tm:
        tm_eff, Bp = B, B
    else:
        tm_eff = tm
        Bp = -(-B // tm) * tm
    if Bp != B:
        x = jnp.pad(x, ((0, Bp - B), (0, 0)))

    # bf16 operands for the MXU (accumulation stays f32 via preferred_element_type).
    if use_bf16:
        mdt = jnp.bfloat16
        x = x.astype(mdt)
        w1c, w2c, w3c = w1.astype(mdt), w2.astype(mdt), w3.astype(mdt)
    else:
        w1c, w2c, w3c = w1, w2, w3

    grid = (Bp // tm_eff,)
    out = pl.pallas_call(
        _generator_kernel,
        out_shape=jax.ShapeDtypeStruct((Bp, O), jnp.float32),
        grid_spec=pltpu.PrefetchScalarGridSpec(
            num_scalar_prefetch=0,
            grid=grid,
            in_specs=[
                pl.BlockSpec((tm_eff, D), lambda i: (i, 0)),   # x tile over batch
                pl.BlockSpec((D, H1), lambda i: (0, 0)),       # W1 (resident)
                pl.BlockSpec((1, H1), lambda i: (0, 0)),       # b1
                pl.BlockSpec((H1, H2), lambda i: (0, 0)),      # W2 (resident)
                pl.BlockSpec((1, H2), lambda i: (0, 0)),       # b2
                pl.BlockSpec((H2, O), lambda i: (0, 0)),       # W3 (resident)
                pl.BlockSpec((1, O), lambda i: (0, 0)),        # b3
            ],
            out_specs=pl.BlockSpec((tm_eff, O), lambda i: (i, 0)),
        ),
        compiler_params=pltpu.CompilerParams(
            dimension_semantics=("parallel",)),
    )(x, w1c, b1, w2c, b2, w3c, b3)

    if Bp != B:
        out = out[:B]
    return out


def init_params(key, input_dim):
    """Deterministic init mimicking PyTorch nn.Linear default (U[-1/sqrt(fan_in), 1/sqrt(fan_in)])."""
    dims = [(input_dim, 128), (128, 256), (256, 500)]
    params = []
    for (fan_in, fan_out) in dims:
        key, kw, kb = jax.random.split(key, 3)
        bound = 1.0 / (fan_in ** 0.5)
        w = jax.random.uniform(kw, (fan_in, fan_out), jnp.float32, -bound, bound)
        b = jax.random.uniform(kb, (1, fan_out), jnp.float32, -bound, bound)
        params += [w, b]
    return tuple(params)


def reference_forward(x, params):
    w1, b1, w2, b2, w3, b3 = params
    h1 = jnp.maximum(x @ w1 + b1, 0.0)
    h2 = jnp.maximum(h1 @ w2 + b2, 0.0)
    return jnp.tanh(h2 @ w3 + b3)


if __name__ == "__main__":
    key = jax.random.PRNGKey(0)
    key, kx = jax.random.split(key)

    B, input_dim = 16, 32
    x = jax.random.normal(kx, (B, input_dim), jnp.float32)
    params = init_params(key, input_dim)

    out = generator_forward(x, params)          # bf16 MXU operands, f32 accumulate
    out = jax.block_until_ready(out)

    ref = reference_forward(x, params)           # f32 reference
    assert out.shape == (B, 500)
    # bf16 matmul operands -> relaxed tolerance vs. the f32 reference.
    assert jnp.allclose(out, ref, atol=2e-2, rtol=2e-2)

    # Also sanity-check the pure-f32 path tightly.
    out_f32 = jax.block_until_ready(generator_forward(x, params, use_bf16=False))
    assert jnp.allclose(out_f32, ref, atol=1e-5, rtol=1e-5)

    print("KERNEL_OK")
</pallas_src>

<mosaic_0001>
module attributes {stable_mosaic.version = 11 : i64} {
  func.func @_generator_kernel(%arg0: i32, %arg1: memref<16x32xbf16, #tpu.memory_space<vmem>>, %arg2: memref<32x128xbf16, #tpu.memory_space<vmem>>, %arg3: memref<1x128xf32, #tpu.memory_space<vmem>>, %arg4: memref<128x256xbf16, #tpu.memory_space<vmem>>, %arg5: memref<1x256xf32, #tpu.memory_space<vmem>>, %arg6: memref<256x500xbf16, #tpu.memory_space<vmem>>, %arg7: memref<1x500xf32, #tpu.memory_space<vmem>>, %arg8: memref<16x500xf32, #tpu.memory_space<vmem>>) attributes {dimension_semantics = [#tpu.dimension_semantics<parallel>], iteration_bounds = array<i64: 1>, scalar_prefetch = 0 : i64, scratch_operands = 0 : i64, tpu.core_type = #tpu.core_type<tc>, window_params = [{transform_indices = @transform_0, window_bounds = array<i64: 16, 32>}, {pipeline_mode = #tpu.pipeline_mode<synchronous>, transform_indices = @transform_1, window_bounds = array<i64: 32, 128>}, {pipeline_mode = #tpu.pipeline_mode<synchronous>, transform_indices = @transform_2, window_bounds = array<i64: 1, 128>}, {pipeline_mode = #tpu.pipeline_mode<synchronous>, transform_indices = @transform_3, window_bounds = array<i64: 128, 256>}, {pipeline_mode = #tpu.pipeline_mode<synchronous>, transform_indices = @transform_4, window_bounds = array<i64: 1, 256>}, {pipeline_mode = #tpu.pipeline_mode<synchronous>, transform_indices = @transform_5, window_bounds = array<i64: 256, 500>}, {pipeline_mode = #tpu.pipeline_mode<synchronous>, transform_indices = @transform_6, window_bounds = array<i64: 1, 500>}, {transform_indices = @transform_7, window_bounds = array<i64: 16, 500>}]} {
    %c0 = arith.constant 0 : index
    %c0_0 = arith.constant 0 : index
    %0 = vector.load %arg1[%c0, %c0_0] : memref<16x32xbf16, #tpu.memory_space<vmem>>, vector<16x32xbf16>
    %c0_1 = arith.constant 0 : index
    %c0_2 = arith.constant 0 : index
    %1 = vector.load %arg2[%c0_1, %c0_2] : memref<32x128xbf16, #tpu.memory_space<vmem>>, vector<32x128xbf16>
    %cst = arith.constant dense<0.000000e+00> : vector<16x128xf32>
    %2 = tpu.matmul %0, %1, %cst {dimension_numbers = #tpu.dot_dimension_numbers<[1], [0], [0], [1], [0, 0, 1, 1], [], []>} : vector<16x32xbf16>, vector<32x128xbf16>, vector<16x128xf32> -> vector<16x128xf32>
    %c0_3 = arith.constant 0 : index
    %c0_4 = arith.constant 0 : index
    %3 = vector.load %arg3[%c0_3, %c0_4] : memref<1x128xf32, #tpu.memory_space<vmem>>, vector<1x128xf32>
    %4 = vector.broadcast %3 : vector<1x128xf32> to vector<16x128xf32>
    %5 = arith.addf %2, %4 : vector<16x128xf32>
    %cst_5 = arith.constant 0.000000e+00 : f32
    %6 = vector.broadcast %cst_5 : f32 to vector<16x128xf32>
    %7 = arith.maximumf %5, %6 : vector<16x128xf32>
    %8 = arith.truncf %7 : vector<16x128xf32> to vector<16x128xbf16>
    %c0_6 = arith.constant 0 : index
    %c0_7 = arith.constant 0 : index
    %9 = vector.load %arg4[%c0_6, %c0_7] : memref<128x256xbf16, #tpu.memory_space<vmem>>, vector<128x256xbf16>
    %cst_8 = arith.constant dense<0.000000e+00> : vector<16x256xf32>
    %10 = tpu.matmul %8, %9, %cst_8 {dimension_numbers = #tpu.dot_dimension_numbers<[1], [0], [0], [1], [0, 0, 1, 1], [], []>} : vector<16x128xbf16>, vector<128x256xbf16>, vector<16x256xf32> -> vector<16x256xf32>
    %c0_9 = arith.constant 0 : index
    %c0_10 = arith.constant 0 : index
    %11 = vector.load %arg5[%c0_9, %c0_10] : memref<1x256xf32, #tpu.memory_space<vmem>>, vector<1x256xf32>
    %12 = vector.broadcast %11 : vector<1x256xf32> to vector<16x256xf32>
    %13 = arith.addf %10, %12 : vector<16x256xf32>
    %cst_11 = arith.constant 0.000000e+00 : f32
    %14 = vector.broadcast %cst_11 : f32 to vector<16x256xf32>
    %15 = arith.maximumf %13, %14 : vector<16x256xf32>
    %16 = arith.truncf %15 : vector<16x256xf32> to vector<16x256xbf16>
    %c0_12 = arith.constant 0 : index
    %c0_13 = arith.constant 0 : index
    %17 = vector.load %arg6[%c0_12, %c0_13] : memref<256x500xbf16, #tpu.memory_space<vmem>>, vector<256x500xbf16>
    %cst_14 = arith.constant dense<0.000000e+00> : vector<16x500xf32>
    %18 = tpu.matmul %16, %17, %cst_14 {dimension_numbers = #tpu.dot_dimension_numbers<[1], [0], [0], [1], [0, 0, 1, 1], [], []>} : vector<16x256xbf16>, vector<256x500xbf16>, vector<16x500xf32> -> vector<16x500xf32>
    %c0_15 = arith.constant 0 : index
    %c0_16 = arith.constant 0 : index
    %19 = vector.load %arg7[%c0_15, %c0_16] : memref<1x500xf32, #tpu.memory_space<vmem>>, vector<1x500xf32>
    %20 = vector.broadcast %19 : vector<1x500xf32> to vector<16x500xf32>
    %21 = arith.addf %18, %20 : vector<16x500xf32>
    %22 = math.tanh %21 : vector<16x500xf32>
    %c0_17 = arith.constant 0 : index
    %c0_18 = arith.constant 0 : index
    %23 = vector.load %arg8[%c0_17, %c0_18] : memref<16x500xf32, #tpu.memory_space<vmem>>, vector<16x500xf32>
    tpu.vector_store %arg8[%c0_17, %c0_18], %22 {strides = array<i32>} : memref<16x500xf32, #tpu.memory_space<vmem>>, vector<16x500xf32>,
    return
  }
  func.func @transform_0(%arg0: i32) -> (i32, i32) {
    %c0_i32 = arith.constant 0 : i32
    %c0_i32_0 = arith.constant 0 : i32
    return %arg0, %c0_i32 : i32, i32
  }
  func.func @transform_1(%arg0: i32) -> (i32, i32) {
    %c0_i32 = arith.constant 0 : i32
    %c0_i32_0 = arith.constant 0 : i32
    %c0_i32_1 = arith.constant 0 : i32
    return %c0_i32, %c0_i32_0 : i32, i32
  }
  func.func @transform_2(%arg0: i32) -> (i32, i32) {
    %c0_i32 = arith.constant 0 : i32
    %c0_i32_0 = arith.constant 0 : i32
    %c0_i32_1 = arith.constant 0 : i32
    return %c0_i32, %c0_i32_0 : i32, i32
  }
  func.func @transform_3(%arg0: i32) -> (i32, i32) {
    %c0_i32 = arith.constant 0 : i32
    %c0_i32_0 = arith.constant 0 : i32
    %c0_i32_1 = arith.constant 0 : i32
    return %c0_i32, %c0_i32_0 : i32, i32
  }
  func.func @transform_4(%arg0: i32) -> (i32, i32) {
    %c0_i32 = arith.constant 0 : i32
    %c0_i32_0 = arith.constant 0 : i32
    %c0_i32_1 = arith.constant 0 : i32
    return %c0_i32, %c0_i32_0 : i32, i32
  }
  func.func @transform_5(%arg0: i32) -> (i32, i32) {
    %c0_i32 = arith.constant 0 : i32
    %c0_i32_0 = arith.constant 0 : i32
    %c0_i32_1 = arith.constant 0 : i32
    return %c0_i32, %c0_i32_0 : i32, i32
  }
  func.func @transform_6(%arg0: i32) -> (i32, i32) {
    %c0_i32 = arith.constant 0 : i32
    %c0_i32_0 = arith.constant 0 : i32
    %c0_i32_1 = arith.constant 0 : i32
    return %c0_i32, %c0_i32_0 : i32, i32
  }
  func.func @transform_7(%arg0: i32) -> (i32, i32) {
    %c0_i32 = arith.constant 0 : i32
    %c0_i32_0 = arith.constant 0 : i32
    return %arg0, %c0_i32 : i32, i32
  }
}

</mosaic_0001>

<bundles_post_ra>
// kernel: tpu_custom_call.1
= control target key start
LH: loop header
LB: loop body
LE: loop exit
PB: predicated region body
PF: predicated region fallthrough
CT: control target
= control target key end

     0   :  { %v1053_v1 = vmov 0.0   ;;  %vm1054_vm0 = vmmov 0   ;;  %vm58_vm1 = vcmask 261120   ;;  %s1371_s0 = inlined_call_operand.vmem [shape: bf16[16,32], index: 0, kind: input, shape index: {}]   ;;  %s1372_s1 = inlined_call_operand.vmem [shape: bf16[32,128], index: 1, kind: input, shape index: {}]   ;;  %s1373_s2 = inlined_call_operand.vmem [shape: f32[1,128], index: 2, kind: input, shape index: {}]   ;;  %s1374_s3 = inlined_call_operand.vmem [shape: bf16[128,256], index: 3, kind: input, shape index: {}]   ;;  %s1375_s4 = inlined_call_operand.vmem [shape: f32[1,256], index: 4, kind: input, shape index: {}]   ;;  %s1376_s5 = inlined_call_operand.vmem [shape: bf16[256,500], index: 5, kind: input, shape index: {}]   ;;  %s1377_s6 = inlined_call_operand.vmem [shape: f32[1,500], index: 6, kind: input, shape index: {}]   ;;  %s1378_s7 = inlined_call_operand.hbm [shape: f32[16,500], index: 7, kind: output, shape index: {}]  }
   0x1   :  { %v890_v0 = vld [vmem:[%s1372_s1] sm:$0xff]   ;;  %876 = vmatprep.subr.bf16.mxu0 %v1053_v1  ;;  %v891_v2 = vld [vmem:[%s1372_s1 + $0x8] sm:$0xff]   ;;  %880 = vmatprep.mubr.msk.bf16.mxu0 %vm1054_vm0, %v1053_v1  ;;  %v896_v6 = vld [vmem:[%s1374_s3 + $0x14] ss:$8 sps:$4 sm:$0xff]  }
   0x2   :  { %877 = vmatpush3.bf16.msra.mxu0 %v890_v0  ;;  %v893_v3 = vld [vmem:[%s1374_s3 + $0x4] ss:$8 sps:$4 sm:$0xff]   ;;  %v895_v4 = vld [vmem:[%s1374_s3] ss:$8 sps:$4 sm:$0xff]   ;;  %v898_v7 = vld [vmem:[%s1374_s3 + $0x10] ss:$8 sps:$4 sm:$0xff]  }
   0x3   :  { %878 = vmatprep.subr.bf16.mxu0 %v1053_v1  ;;  %v892_v5 = vld [vmem:[%s1371_s0] sm:$0xff]   ;;  %214 = vmatprep.subr.bf16.mxu1 %v893_v3  ;;  %v902_v10 = vld [vmem:[%s1374_s3 + $0x34] ss:$8 sps:$4 sm:$0xff]   ;;  %v904_v11 = vld [vmem:[%s1374_s3 + $0x30] ss:$8 sps:$4 sm:$0xff]  }
   0x4   :  { %215 = vmatpush1.bf16.msra.mxu1 %v895_v4  ;;  %v899_v8 = vld [vmem:[%s1374_s3 + $0x24] ss:$8 sps:$4 sm:$0xff]   ;;  %v901_v9 = vld [vmem:[%s1374_s3 + $0x20] ss:$8 sps:$4 sm:$0xff]   ;;  %v908_v14 = vld [vmem:[%s1374_s3 + $0x54] ss:$8 sps:$4 sm:$0xff]  }
   0x5   :  { %216 = vmatprep.subr.bf16.mxu1 %v896_v6  ;;  %v905_v12 = vld [vmem:[%s1374_s3 + $0x44] ss:$8 sps:$4 sm:$0xff]   ;;  %v907_v13 = vld [vmem:[%s1374_s3 + $0x40] ss:$8 sps:$4 sm:$0xff]   ;;  %v910_v15 = vld [vmem:[%s1374_s3 + $0x50] ss:$8 sps:$4 sm:$0xff]  }
   0x6   :  { %879 = vmatpush3.bf16.msra.mxu0 %v891_v2 }
   0x8   :  { %217 = vmatpush1.bf16.msra.mxu1 %v898_v7 }
   0x9   :  { %881 = vmatmul.mubr.msk.bf16.vlgmr.msra.gmra.mrb[0].mxu0 %vm58_vm1, %v892_v5  ;;  %218 = vmatprep.subr.bf16.mxu1 %v899_v8 }
   0xc   :  { %219 = vmatpush1.bf16.msra.mxu1 %v901_v9 }
   0xd   :  { %220 = vmatprep.subr.bf16.mxu1 %v902_v10 }
  0x10   :  { %221 = vmatpush1.bf16.msra.mxu1 %v904_v11 }
  0x11   :  { %222 = vmatprep.subr.bf16.mxu1 %v905_v12 }
  0x14   :  { %223 = vmatpush1.bf16.msra.mxu1 %v907_v13 }
  0x15   :  { %224 = vmatprep.subr.bf16.mxu1 %v908_v14 }
  0x18   :  { %225 = vmatpush1.bf16.msra.mxu1 %v910_v15 }
  0x19   :  { %12 = vsyncpa [#allocation3], 0  ;;  %v911_v16 = vld [vmem:[%s1374_s3 + $0x64] ss:$8 sps:$4 sm:$0xff]   ;;  %v913_v17 = vld [vmem:[%s1374_s3 + $0x60] ss:$8 sps:$4 sm:$0xff]  }
  0x1a   :  { %226 = vmatprep.subr.bf16.mxu1 %v911_v16  ;;  %v914_v18 = vld [vmem:[%s1374_s3 + $0x74] ss:$8 sps:$4 sm:$0xff]   ;;  %v916_v19 = vld [vmem:[%s1374_s3 + $0x70] ss:$8 sps:$4 sm:$0xff]   ;;  %v1055_v20 = vmov 0   ;;  %vm766_vm2 = vcmask 949248  }
  0x1b   :  { %246 = vmatprep.mubr.bf16.mxu1 %v1055_v20  ;;  %v917_v21 = vld [vmem:[%s1376_s5] ss:$16 sps:$4 sm:$0xff]   ;;  %v919_v22 = vld [vmem:[%s1376_s5 + $0x4] ss:$16 sps:$4 sm:$0xff]   ;;  %v922_v23 = vld [vmem:[%s1376_s5 + $0xc] ss:$16 sps:$4 sm:$0xff]  }
  0x1c   :  { %227 = vmatpush1.bf16.msra.mxu1 %v913_v17  ;;  %v925_v24 = vld [vmem:[%s1376_s5 + $0x24] ss:$16 sps:$4 sm:$0xff]   ;;  %669 = vmatprep.subr.bf16.mxu0 %v919_v22  ;;  %v923_v25 = vld [vmem:[%s1376_s5 + $0x20] ss:$16 sps:$4 sm:$0xff]   ;;  %v920_v59 = vld [vmem:[%s1376_s5 + $0x8] ss:$16 sps:$4 sm:$0xff]  }
  0x1d   :  { %228 = vmatprep.subr.bf16.mxu1 %v914_v18  ;;  %670 = vmatpush1.bf16.msra.mxu0 %v917_v21  ;;  %v931_v26 = vld [vmem:[%s1376_s5 + $0x44] ss:$16 sps:$4 sm:$0xff]   ;;  %v929_v27 = vld [vmem:[%s1376_s5 + $0x40] ss:$16 sps:$4 sm:$0xff]   ;;  %v928_v61 = vld [vmem:[%s1376_s5 + $0x2c] ss:$16 sps:$4 sm:$0xff]  }
  0x1e   :  { %671 = vmatprep.subr.bf16.mxu0 %v925_v24  ;;  %v937_v28 = vld [vmem:[%s1376_s5 + $0x64] ss:$16 sps:$4 sm:$0xff]   ;;  %v935_v29 = vld [vmem:[%s1376_s5 + $0x60] ss:$16 sps:$4 sm:$0xff]   ;;  %v926_v62 = vld [vmem:[%s1376_s5 + $0x28] ss:$16 sps:$4 sm:$0xff]  }
  0x1f   :  { %v943_v30 = vld [vmem:[%s1376_s5 + $0x84] ss:$16 sps:$4 sm:$0xff]   ;;  %v941_v31 = vld [vmem:[%s1376_s5 + $0x80] ss:$16 sps:$4 sm:$0xff]   ;;  %v934_v63 = vld [vmem:[%s1376_s5 + $0x4c] ss:$16 sps:$4 sm:$0xff]  }
  0x20   :  { %229 = vmatpush1.bf16.msra.mxu1 %v916_v19  ;;  %v949_v32 = vld [vmem:[%s1376_s5 + $0xa4] ss:$16 sps:$4 sm:$0xff]   ;;  %v947_v33 = vld [vmem:[%s1376_s5 + $0xa0] ss:$16 sps:$4 sm:$0xff]   ;;  %v932_v0 = vld [vmem:[%s1376_s5 + $0x48] ss:$16 sps:$4 sm:$0xff]  }
  0x21   :  { %712 = vmatprep.subr.bf16.mxu1 %v922_v23  ;;  %672 = vmatpush1.bf16.msra.mxu0 %v923_v25  ;;  %v955_v34 = vld [vmem:[%s1376_s5 + $0xc4] ss:$16 sps:$4 sm:$0xff]   ;;  %v953_v35 = vld [vmem:[%s1376_s5 + $0xc0] ss:$16 sps:$4 sm:$0xff]   ;;  %v940_v1 = vld [vmem:[%s1376_s5 + $0x6c] ss:$16 sps:$4 sm:$0xff]  }
  0x22   :  { %673 = vmatprep.subr.bf16.mxu0 %v931_v26  ;;  %v961_v36 = vld [vmem:[%s1376_s5 + $0xe4] ss:$16 sps:$4 sm:$0xff]   ;;  %v959_v37 = vld [vmem:[%s1376_s5 + $0xe0] ss:$16 sps:$4 sm:$0xff]   ;;  %v938_v2 = vld [vmem:[%s1376_s5 + $0x68] ss:$16 sps:$4 sm:$0xff]  }
  0x23   :  { %v967_v38 = vld [vmem:[%s1376_s5 + $0x104] ss:$16 sps:$4 sm:$0xff]   ;;  %v965_v39 = vld [vmem:[%s1376_s5 + $0x100] ss:$16 sps:$4 sm:$0xff]   ;;  %v946_v3 = vld [vmem:[%s1376_s5 + $0x8c] ss:$16 sps:$4 sm:$0xff]  }
  0x24   :  { %v973_v40 = vld [vmem:[%s1376_s5 + $0x124] ss:$16 sps:$4 sm:$0xff]   ;;  %v971_v41 = vld [vmem:[%s1376_s5 + $0x120] ss:$16 sps:$4 sm:$0xff]   ;;  %v944_v4 = vld [vmem:[%s1376_s5 + $0x88] ss:$16 sps:$4 sm:$0xff]  }
  0x25   :  { %674 = vmatpush1.bf16.msra.mxu0 %v929_v27  ;;  %v979_v42 = vld [vmem:[%s1376_s5 + $0x144] ss:$16 sps:$4 sm:$0xff]   ;;  %v977_v43 = vld [vmem:[%s1376_s5 + $0x140] ss:$16 sps:$4 sm:$0xff]   ;;  %v952_v5 = vld [vmem:[%s1376_s5 + $0xac] ss:$16 sps:$4 sm:$0xff]  }
  0x26   :  { %675 = vmatprep.subr.bf16.mxu0 %v937_v28  ;;  %v985_v44 = vld [vmem:[%s1376_s5 + $0x164] ss:$16 sps:$4 sm:$0xff]   ;;  %v983_v45 = vld [vmem:[%s1376_s5 + $0x160] ss:$16 sps:$4 sm:$0xff]   ;;  %v950_v6 = vld [vmem:[%s1376_s5 + $0xa8] ss:$16 sps:$4 sm:$0xff]  }
  0x27   :  { %v991_v46 = vld [vmem:[%s1376_s5 + $0x184] ss:$16 sps:$4 sm:$0xff]   ;;  %v989_v47 = vld [vmem:[%s1376_s5 + $0x180] ss:$16 sps:$4 sm:$0xff]   ;;  %v958_v7 = vld [vmem:[%s1376_s5 + $0xcc] ss:$16 sps:$4 sm:$0xff]  }
  0x28   :  { %v997_v48 = vld [vmem:[%s1376_s5 + $0x1a4] ss:$16 sps:$4 sm:$0xff]   ;;  %v995_v49 = vld [vmem:[%s1376_s5 + $0x1a0] ss:$16 sps:$4 sm:$0xff]   ;;  %v956_v8 = vld [vmem:[%s1376_s5 + $0xc8] ss:$16 sps:$4 sm:$0xff]  }
  0x29   :  { %676 = vmatpush1.bf16.msra.mxu0 %v935_v29  ;;  %v788_v50 = vld [vmem:[%s1373_s2] ss:$0 sm:$0xff]  ;;  %v964_v9 = vld [vmem:[%s1376_s5 + $0xec] ss:$16 sps:$4 sm:$0xff]   ;;  %v962_v10 = vld [vmem:[%s1376_s5 + $0xe8] ss:$16 sps:$4 sm:$0xff]  }
  0x2a   :  { %677 = vmatprep.subr.bf16.mxu0 %v943_v30  ;;  %v970_v11 = vld [vmem:[%s1376_s5 + $0x10c] ss:$16 sps:$4 sm:$0xff]   ;;  %v968_v12 = vld [vmem:[%s1376_s5 + $0x108] ss:$16 sps:$4 sm:$0xff]   ;;  %v1003_v23 = vld [vmem:[%s1376_s5 + $0x1c4] ss:$16 sps:$4 sm:$0xff]  }
  0x2b   :  { %v976_v13 = vld [vmem:[%s1376_s5 + $0x12c] ss:$16 sps:$4 sm:$0xff]   ;;  %v974_v14 = vld [vmem:[%s1376_s5 + $0x128] ss:$16 sps:$4 sm:$0xff]   ;;  %v1001_v25 = vld [vmem:[%s1376_s5 + $0x1c0] ss:$16 sps:$4 sm:$0xff]  }
  0x2c   :  { %v982_v15 = vld [vmem:[%s1376_s5 + $0x14c] ss:$16 sps:$4 sm:$0xff]   ;;  %v980_v16 = vld [vmem:[%s1376_s5 + $0x148] ss:$16 sps:$4 sm:$0xff]   ;;  %v1009_v27 = vld [vmem:[%s1376_s5 + $0x1e4] ss:$16 sps:$4 sm:$0xff]  }
  0x2d   :  { %678 = vmatpush1.bf16.msra.mxu0 %v941_v31  ;;  %v988_v17 = vld [vmem:[%s1376_s5 + $0x16c] ss:$16 sps:$4 sm:$0xff]   ;;  %v986_v18 = vld [vmem:[%s1376_s5 + $0x168] ss:$16 sps:$4 sm:$0xff]   ;;  %v1007_v29 = vld [vmem:[%s1376_s5 + $0x1e0] ss:$16 sps:$4 sm:$0xff]   ;;  %v124_v31 = vlaneseq }
  0x2e   :  { %679 = vmatprep.subr.bf16.mxu0 %v949_v32  ;;  %v994_v19 = vld [vmem:[%s1376_s5 + $0x18c] ss:$16 sps:$4 sm:$0xff]   ;;  %v992_v20 = vld [vmem:[%s1376_s5 + $0x188] ss:$16 sps:$4 sm:$0xff]  }
  0x2f   :  { %v1000_v21 = vld [vmem:[%s1376_s5 + $0x1ac] ss:$16 sps:$4 sm:$0xff]   ;;  %v998_v22 = vld [vmem:[%s1376_s5 + $0x1a8] ss:$16 sps:$4 sm:$0xff]   ;;  %v125_v32 = vshrl.u32 %v124_v31, 7 }
  0x30   :  { %v1006_v24 = vld [vmem:[%s1376_s5 + $0x1cc] ss:$16 sps:$4 sm:$0xff]   ;;  %v1004_v26 = vld [vmem:[%s1376_s5 + $0x1c8] ss:$16 sps:$4 sm:$0xff]  }
  0x31   :  { %680 = vmatpush1.bf16.msra.mxu0 %v947_v33  ;;  %v1012_v28 = vld [vmem:[%s1376_s5 + $0x1ec] ss:$16 sps:$4 sm:$0xff]   ;;  %v1010_v30 = vld [vmem:[%s1376_s5 + $0x1e8] ss:$16 sps:$4 sm:$0xff]   ;;  %v126_v33 = vsub.s32 0, %v125_v32 }
  0x32   :  { %681 = vmatprep.subr.bf16.mxu0 %v955_v34  ;;  %v122_v34 = vld [vmem:[%s1375_s4] sm:$0x3] }
  0x35   :  { %682 = vmatpush1.bf16.msra.mxu0 %v953_v35  ;;  %v130_v35 = vsub.s32 1, %v125_v32 }
  0x36   :  { %683 = vmatprep.subr.bf16.mxu0 %v961_v36  ;;  %v127_v36 = vrot.slane %v122_v34, %v126_v33 }
  0x39   :  { %684 = vmatpush1.bf16.msra.mxu0 %v959_v37  ;;  %v131_v37 = vrot.slane %v122_v34, %v130_v35 }
  0x3a   :  { %685 = vmatprep.subr.bf16.mxu0 %v967_v38 }
  0x3d   :  { %686 = vmatpush1.bf16.msra.mxu0 %v965_v39 }
  0x3e   :  { %687 = vmatprep.subr.bf16.mxu0 %v973_v40 }
  0x41   :  { %688 = vmatpush1.bf16.msra.mxu0 %v971_v41 }
  0x42   :  { %689 = vmatprep.subr.bf16.mxu0 %v979_v42 }
  0x45   :  { %690 = vmatpush1.bf16.msra.mxu0 %v977_v43 }
  0x46   :  { %691 = vmatprep.subr.bf16.mxu0 %v985_v44 }
  0x49   :  { %692 = vmatpush1.bf16.msra.mxu0 %v983_v45 }
  0x4a   :  { %693 = vmatprep.subr.bf16.mxu0 %v991_v46 }
  0x4d   :  { %694 = vmatpush1.bf16.msra.mxu0 %v989_v47 }
  0x4e   :  { %695 = vmatprep.subr.bf16.mxu0 %v997_v48 }
  0x51   :  { %696 = vmatpush1.bf16.msra.mxu0 %v995_v49 }
  0x52   :  { %697 = vmatprep.subr.bf16.mxu0 %v1003_v23 }
  0x55   :  { %698 = vmatpush1.bf16.msra.mxu0 %v1001_v25 }
  0x56   :  { %699 = vmatprep.subr.bf16.mxu0 %v1009_v27 }
  0x59   :  { %700 = vmatpush1.bf16.msra.mxu0 %v1007_v29 }
  0xdc   :  { %v96_v51 = vpop.f32.mrb[0].mxu0 }
  0xdd   :  { %v97_v52 = vadd.f32 %v788_v50, %v96_v51  ;;  %v882_v53 = vpop.f32.mrb[1].mxu0 }
  0xde   :  { %v99_v54 = vpop.f32.mrb[2].mxu0  ;;  %v327_v53 = vld [vmem:[%s1377_s6] sm:$0xf]  ;;  %s1056_s6 = smov [#allocation2]  }
  0xdf   :  { %v100_v55 = vadd.f32 %v788_v50, %v99_v54  ;;  %v883_v56 = vpop.f32.mrb[3].mxu0  ;;  %v103_v57 = vmax.f32 %v97_v52, 0.0  ;;  %v339_v52 = vsub.s32 2, %v125_v32  ;;  %v343_v54 = vsub.s32 3, %v125_v32  ;;  %s777_s1 = sshll.u32 %s1056_s6, 4  ;;  %s778_s1 = int_to_ptr.vmem [resolvable:$true] %s777_s1 }
  0xe0   :  { %s1029_s13 = scalar_lea.vmem %s778_s1, 1024  ;;  %p1034_p1 = scmp.lt.s32.totalorder %s778_s1, %s778_s1 }
  0xe1   :  { %v104_v58 = vmax.f32 %v100_v55, 0.0  ;;  %v332_v55 = vrot.slane %v327_v53, %v126_v33  ;;  %v340_v56 = vrot.slane %v327_v53, %v339_v52  ;;  %p1030_p0 = scmp.ne.s32.totalorder %s778_s1, %s1029_s13  ;;  %p1035_p2 = scmp.lt.s32.totalorder %s1029_s13, %s1029_s13 }
  0xe3   :  { %v105_v60 = vpack.c.bf16 %v104_v58, %v103_v57  ;;  %v336_v57 = vrot.slane %v327_v53, %v130_v35  ;;  %v344_v58 = vrot.slane %v327_v53, %v343_v54  ;;  %p1036_p3 = por %p1035_p2, %p1034_p1 }
  0xe5   :  { %247 = vmatmul.mubr.bf16.vlgmr.msra.gmra.mrb[0].mxu1 %v105_v60  ;;  %p1037_p4 = pnand %p1036_p3, %p1030_p0 }
  0xe6   :  { %713 = vmatpush1.bf16.msra.mxu1 %v920_v59 }
  0xe7   :  { %714 = vmatprep.subr.bf16.mxu1 %v928_v61 }
  0xea   :  { %715 = vmatpush1.bf16.msra.mxu1 %v926_v62 }
  0xeb   :  { %716 = vmatprep.subr.bf16.mxu1 %v934_v63 }
  0xee   :  { %717 = vmatpush1.bf16.msra.mxu1 %v932_v0 }
  0xef   :  { %718 = vmatprep.subr.bf16.mxu1 %v940_v1 }
  0xf2   :  { %719 = vmatpush1.bf16.msra.mxu1 %v938_v2 }
  0xf3   :  { %720 = vmatprep.subr.bf16.mxu1 %v946_v3 }
  0xf6   :  { %721 = vmatpush1.bf16.msra.mxu1 %v944_v4 }
  0xf7   :  { %722 = vmatprep.subr.bf16.mxu1 %v952_v5 }
  0xfa   :  { %723 = vmatpush1.bf16.msra.mxu1 %v950_v6 }
  0xfb   :  { %724 = vmatprep.subr.bf16.mxu1 %v958_v7 }
  0xfe   :  { %725 = vmatpush1.bf16.msra.mxu1 %v956_v8 }
  0xff   :  { %726 = vmatprep.subr.bf16.mxu1 %v964_v9 }
 0x102   :  { %727 = vmatpush1.bf16.msra.mxu1 %v962_v10 }
 0x103   :  { %728 = vmatprep.subr.bf16.mxu1 %v970_v11 }
 0x106   :  { %729 = vmatpush1.bf16.msra.mxu1 %v968_v12 }
 0x107   :  { %730 = vmatprep.subr.bf16.mxu1 %v976_v13 }
 0x10a   :  { %731 = vmatpush1.bf16.msra.mxu1 %v974_v14 }
 0x10b   :  { %732 = vmatprep.subr.bf16.mxu1 %v982_v15 }
 0x10e   :  { %733 = vmatpush1.bf16.msra.mxu1 %v980_v16 }
 0x10f   :  { %734 = vmatprep.subr.bf16.mxu1 %v988_v17 }
 0x112   :  { %735 = vmatpush1.bf16.msra.mxu1 %v986_v18 }
 0x113   :  { %736 = vmatprep.subr.bf16.mxu1 %v994_v19 }
 0x116   :  { %737 = vmatpush1.bf16.msra.mxu1 %v992_v20 }
 0x117   :  { %738 = vmatprep.subr.bf16.mxu1 %v1000_v21 }
 0x11a   :  { %739 = vmatpush1.bf16.msra.mxu1 %v998_v22 }
 0x11b   :  { %740 = vmatprep.subr.bf16.mxu1 %v1006_v24 }
 0x11e   :  { %741 = vmatpush1.bf16.msra.mxu1 %v1004_v26 }
 0x11f   :  { %742 = vmatprep.subr.bf16.mxu1 %v1012_v28 }
 0x122   :  { %743 = vmatpush1.bf16.msra.mxu1 %v1010_v30 }
 0x1b8   :  { %v248_v38 = vpop.f32.mrb[0].mxu1 }
 0x1b9   :  { %v249_v39 = vadd.f32 %v248_v38, %v127_v36  ;;  %v250_v40 = vpop.f32.mrb[1].mxu1 }
 0x1ba   :  { %v251_v41 = vadd.f32 %v250_v40, %v131_v37  ;;  %v252_v42 = vpop.f32.mrb[2].mxu1 }
 0x1bb   :  { %v253_v43 = vadd.f32 %v252_v42, %v127_v36  ;;  %v254_v44 = vpop.f32.mrb[3].mxu1  ;;  %v257_v46 = vmax.f32 %v249_v39, 0.0 }
 0x1bc   :  { %v255_v45 = vadd.f32 %v254_v44, %v131_v37  ;;  %v258_v48 = vmax.f32 %v251_v41, 0.0 }
 0x1bd   :  { %v259_v47 = vmax.f32 %v253_v43, 0.0 }
 0x1be   :  { %v260_v49 = vmax.f32 %v255_v45, 0.0 }
 0x1bf   :  { %v261_v50 = vpack.c.bf16 %v259_v47, %v257_v46 }
 0x1c0   :  { %v262_v51 = vpack.c.bf16 %v260_v49, %v258_v48 }
 0x1c2   :  { %701 = vmatprep.mubr.bf16.mxu0 %v262_v51  ;;  %744 = vmatprep.mubr.bf16.mxu1 %v262_v51 }
 0x1c3   :  { %702 = vmatmul.mubr.bf16.vlgmr.msra.gmra.mrb[4].mxu0 %v261_v50  ;;  %745 = vmatmul.mubr.bf16.vlgmr.msra.gmra.mrb[4].mxu1 %v261_v50 }
 0x296   :  { %v703_v59 = vpop.f32.mrb[4].mxu0  ;;  %v746_v60 = vpop.f32.mrb[4].mxu1 }
 0x297   :  { %v704_v61 = vadd.f32 %v703_v59, %v332_v55  ;;  %v747_v62 = vadd.f32 %v746_v60, %v340_v56  ;;  %v705_v63 = vpop.f32.mrb[5].mxu0  ;;  %v748_v0 = vpop.f32.mrb[5].mxu1 }
 0x298   :  { %v706_v1 = vadd.f32 %v705_v63, %v336_v57  ;;  %v749_v2 = vadd.f32 %v748_v0, %v344_v58  ;;  %v707_v3 = vpop.f32.mrb[6].mxu0  ;;  %v750_v4 = vpop.f32.mrb[6].mxu1 }
 0x299   :  { %1013 = vtanh.f32 %v704_v61  ;;  %v708_v5 = vadd.f32 %v707_v3, %v332_v55  ;;  %v709_v6 = vpop.f32.mrb[7].mxu0  ;;  %v752_v7 = vpop.f32.mrb[7].mxu1  ;;  %v751_v8 = vadd.f32 %v750_v4, %v340_v56 }
 0x29a   :  { %1015 = vtanh.f32 %v747_v62  ;;  %v710_v9 = vadd.f32 %v709_v6, %v336_v57  ;;  %v753_v10 = vadd.f32 %v752_v7, %v344_v58 }
 0x29b   :  { %1017 = vtanh.f32 %v706_v1 }
 0x29c   :  { %1019 = vtanh.f32 %v749_v2 }
 0x29d   :  { %1021 = vtanh.f32 %v708_v5 }
 0x29e   :  { %1023 = vtanh.f32 %v751_v8 }
 0x29f   :  { %1025 = vtanh.f32 %v710_v9 }
 0x2a0   :  { %1027 = vtanh.f32 %v753_v10 }
 0x2a3   :  { %v1014_v11 = vpop.eup %1013 }
 0x2a4   :  { %v1016_v12 = vpop.eup %1015  ;;  %763 = vst [vmem:[#allocation2] sm:$0xff] %v1014_v11 }
 0x2a5   :  { %v1018_v13 = vpop.eup %1017  ;;  %765 = vst [vmem:[#allocation2 + $0x10] sm:$0xff] %v1016_v12 }
 0x2a6   :  { %v1020_v14 = vpop.eup %1019  ;;  %764 = vst [vmem:[#allocation2 + $0x8] sm:$0xff] %v1018_v13 }
 0x2a7   :  { %v1022_v15 = vpop.eup %1021  ;;  %767 = vst.msk [vmem:[#allocation2 + $0x18] sm:$0xff] %vm766_vm2, %v1020_v14 }
 0x2a8   :  { %v1024_v16 = vpop.eup %1023  ;;  %768 = vst [vmem:[#allocation2 + $0x20] sm:$0xff] %v1022_v15 }
 0x2a9   :  { %v1026_v17 = vpop.eup %1025  ;;  %770 = vst [vmem:[#allocation2 + $0x30] sm:$0xff] %v1024_v16 }
 0x2aa   :  { %v1028_v18 = vpop.eup %1027  ;;  %769 = vst [vmem:[#allocation2 + $0x28] sm:$0xff] %v1026_v17 }
 0x2ab   :  { %771 = vst.msk [vmem:[#allocation2 + $0x38] sm:$0xff] %vm766_vm2, %v1028_v18 }
 0x2ac   :  { %1040 = shalt.err (!%p1037_p4)
}
 0x2ad   :  { %s1041_s0 = scalar_lea.hbm %s1378_s7, 1024 }
 0x2ae   :  { %p1042_p5 = scmp.ne.s32.totalorder %s1378_s7, %s1041_s0  ;;  %p1045_p6 = scmp.lt.u32.totalorder %s1041_s0, %s1378_s7 }
 0x2b0   :  { %p1047_p7 = pnand %p1045_p6, %p1042_p5 }
 0x2b2   :  { %1050 = shalt.err (!%p1047_p7)
}
 0x2b3   :  { %s1057_s3 = smov 512   ;;  %s1058_s20 = smov 32  }
 0x2b4   :  { %783 = dma.vmem_to_hbm [thread:$0]  %s778_s1, 1024, %s1378_s7, [#allocation3], %s1057_s3, %s1057_s3, %s1058_s20  }
 0x2b5   :  { %1051 = dma.done.wait [#allocation3], 1024  }
 0x2b6   :  { %1052 = vsyncadd [#allocation3], 4294966272 }
 0x2b7   :  { %787 = vsyncpa [#allocation3], 1 }

</bundles_post_ra>
